<compile_context>
chip_gen: v6e
topology: v6e:2x2x1
jax: 0.10.0
libtpu: 0.0.40
codegen_flags: <defaults>
</compile_context>

<pallas_src>
import functools

import jax
import jax.numpy as jnp
from jax.experimental import pallas as pl
from jax.experimental.pallas import tpu as pltpu


def _cam_kernel(x_ref, w1_ref, w2_ref, o_ref, sum_ref, max_ref, *,
                hw, hw_padded, tile_hw, n_tile):
    # x_ref : (n_tile, C, tile_hw) f32   (one spatial tile of one batch block)
    # w1_ref: (C, C//r)            f32   (conv1 weight, transposed)
    # w2_ref: (C//r, C)            f32   (conv2 weight, transposed)
    # o_ref : (n_tile, C)          f32
    # sum_ref / max_ref: (n_tile, C) f32 VMEM accumulators (persist over k).
    k = pl.program_id(1)
    n_k = pl.num_programs(1)

    @pl.when(k == 0)
    def _init():
        sum_ref[...] = jnp.zeros_like(sum_ref)
        max_ref[...] = jnp.full_like(max_ref, -jnp.inf)

    x = x_ref[...]  # (n_tile, C, tile_hw)

    if hw_padded != hw:
        # Mask padded lanes out of the max (zero padding already keeps the
        # sum exact).
        lane = jax.lax.broadcasted_iota(jnp.int32, x.shape, 2)
        valid = (k * tile_hw + lane) < hw
        x_for_max = jnp.where(valid, x, -jnp.inf)
    else:
        x_for_max = x

    # Lane reduce (XLU) + VPU accumulate; no divide per tile.
    sum_ref[...] = sum_ref[...] + jnp.sum(x, axis=-1)
    max_ref[...] = jnp.maximum(max_ref[...], jnp.max(x_for_max, axis=-1))

    @pl.when(k == n_k - 1)
    def _finalize():
        avg = sum_ref[...] * (1.0 / float(hw))        # scale exactly once
        mx = max_ref[...]
        # Fuse the two shared-MLP calls: one matmul pair on a (2*n_tile, C) LHS.
        v = jnp.concatenate([avg, mx], axis=0)                              # (2n, C)
        h = jnp.dot(v, w1_ref[...], preferred_element_type=jnp.float32)     # (2n, C/r)
        h = jnp.maximum(h, 0.0)                                             # ReLU
        z2 = jnp.dot(h, w2_ref[...], preferred_element_type=jnp.float32)    # (2n, C)
        z = z2[:n_tile, :] + z2[n_tile:, :]
        o_ref[...] = jax.nn.sigmoid(z).astype(o_ref.dtype)


def _pick_tile_hw(n_tile, c, hw, itemsize=4, budget_bytes=8 << 20):
    """Pick a spatial tile: big enough to amortize per-step overhead, small
    enough that double-buffered input blocks stay well under the scoped VMEM
    limit on every generation (incl. v7x's 64 MiB physical VMEM)."""
    max_lanes = max(128, budget_bytes // max(1, n_tile * c * itemsize))
    cap = min(max_lanes, 2048)
    if hw <= cap:
        return hw                       # single full-extent spatial block
    return max(128, (cap // 128) * 128)  # multiple of 128 → unmasked lane loads


def channel_attention(x, w1_conv, w2_conv, *, tile_hw=None):
    """x: (N, C, H, W) f32; w1_conv: (C//r, C, 1, 1); w2_conv: (C, C//r, 1, 1).

    Returns (N, C, 1, 1) f32, matching the PyTorch module's output.
    """
    n, c, h, w = x.shape
    cr = w1_conv.shape[0]
    hw = h * w

    x_flat = x.reshape(n, c, hw).astype(jnp.float32)
    w1 = w1_conv.reshape(cr, c).T.astype(jnp.float32)  # (C, C//r)
    w2 = w2_conv.reshape(c, cr).T.astype(jnp.float32)  # (C//r, C)

    # Batch tiling: 8-row blocks when that divides N (keeps the (8,128) rule
    # on the output block), otherwise a single full-extent batch block.
    n_tile = 8 if (n > 8 and n % 8 == 0) else n

    if tile_hw is None:
        tile_hw = _pick_tile_hw(n_tile, c, hw)
    if tile_hw >= hw:
        tile_hw = hw
    else:
        tile_hw = max(128, (tile_hw // 128) * 128)

    num_hw_tiles = pl.cdiv(hw, tile_hw)
    hw_padded = num_hw_tiles * tile_hw
    if hw_padded != hw:
        x_flat = jnp.pad(x_flat, ((0, 0), (0, 0), (0, hw_padded - hw)))

    grid = (n // n_tile, num_hw_tiles)

    kernel = functools.partial(
        _cam_kernel, hw=hw, hw_padded=hw_padded, tile_hw=tile_hw, n_tile=n_tile
    )

    out = pl.pallas_call(
        kernel,
        out_shape=jax.ShapeDtypeStruct((n, c), jnp.float32),
        grid=grid,
        in_specs=[
            pl.BlockSpec((n_tile, c, tile_hw), lambda i, k: (i, 0, k)),
            pl.BlockSpec((c, cr), lambda i, k: (0, 0)),   # VMEM-resident weights
            pl.BlockSpec((cr, c), lambda i, k: (0, 0)),
        ],
        out_specs=pl.BlockSpec((n_tile, c), lambda i, k: (i, 0)),
        scratch_shapes=[
            pltpu.VMEM((n_tile, c), jnp.float32),  # running sum
            pltpu.VMEM((n_tile, c), jnp.float32),  # running max
        ],
        compiler_params=pltpu.CompilerParams(
            dimension_semantics=("parallel", "arbitrary"),
        ),
    )(x_flat, w1, w2)

    return out.reshape(n, c, 1, 1)


def reference(x, w1_conv, w2_conv):
    """Pure-JAX reference of the PyTorch forward."""
    n, c, h, w = x.shape
    cr = w1_conv.shape[0]
    avg = jnp.mean(x, axis=(2, 3))  # (N, C)
    mx = jnp.max(x, axis=(2, 3))    # (N, C)
    w1 = w1_conv.reshape(cr, c)
    w2 = w2_conv.reshape(c, cr)

    def mlp(v):
        return jnp.maximum(v @ w1.T, 0.0) @ w2.T

    return jax.nn.sigmoid(mlp(avg) + mlp(mx)).reshape(n, c, 1, 1)


if __name__ == "__main__":
    # channel // ratio must be >= 1 → channels=32 with default ratio=16.
    N, C, H, W = 2, 32, 16, 16
    RATIO = 16
    CR = C // RATIO

    key = jax.random.PRNGKey(0)
    kx, k1, k2, kx2 = jax.random.split(key, 4)

    x = jax.random.normal(kx, (N, C, H, W), dtype=jnp.float32)
    # Deterministic synthetic Conv2d weights (out, in, 1, 1), bias=False.
    w1_conv = jax.random.normal(k1, (CR, C, 1, 1), dtype=jnp.float32) * 0.1
    w2_conv = jax.random.normal(k2, (C, CR, 1, 1), dtype=jnp.float32) * 0.1

    # Primary check: multi-tile spatial reduction (H*W=256 → two 128-lane tiles).
    out = channel_attention(x, w1_conv, w2_conv, tile_hw=128)
    out = jax.block_until_ready(out)
    ref = reference(x, w1_conv, w2_conv)
    assert out.shape == (N, C, 1, 1), out.shape
    assert jnp.allclose(out, ref, atol=1e-5, rtol=1e-5), (
        float(jnp.max(jnp.abs(out - ref)))
    )

    # Secondary check: spatial extent not a multiple of the tile (exercises the
    # zero-pad + masked running-max path).
    x2 = jax.random.normal(kx2, (N, C, 18, 18), dtype=jnp.float32)
    out2 = jax.block_until_ready(channel_attention(x2, w1_conv, w2_conv, tile_hw=128))
    ref2 = reference(x2, w1_conv, w2_conv)
    assert jnp.allclose(out2, ref2, atol=1e-5, rtol=1e-5), (
        float(jnp.max(jnp.abs(out2 - ref2)))
    )

    print("KERNEL_OK")
</pallas_src>

<mosaic_0001>
module attributes {stable_mosaic.version = 11 : i64} {
  func.func @_cam_kernel(%arg0: i32, %arg1: i32, %arg2: memref<2x32x128xf32, #tpu.memory_space<vmem>>, %arg3: memref<32x2xf32, #tpu.memory_space<vmem>>, %arg4: memref<2x32xf32, #tpu.memory_space<vmem>>, %arg5: memref<2x32xf32, #tpu.memory_space<vmem>>, %arg6: memref<2x32xf32, #tpu.memory_space<vmem>>, %arg7: memref<2x32xf32, #tpu.memory_space<vmem>>) attributes {dimension_semantics = [#tpu.dimension_semantics<parallel>, #tpu.dimension_semantics<arbitrary>], iteration_bounds = array<i64: 1, 2>, scalar_prefetch = 0 : i64, scratch_operands = 2 : i64, tpu.core_type = #tpu.core_type<tc>, window_params = [{transform_indices = @transform_0, window_bounds = array<i64: 2, 32, 128>}, {pipeline_mode = #tpu.pipeline_mode<synchronous>, transform_indices = @transform_1, window_bounds = array<i64: 32, 2>}, {pipeline_mode = #tpu.pipeline_mode<synchronous>, transform_indices = @transform_2, window_bounds = array<i64: 2, 32>}, {transform_indices = @transform_3, window_bounds = array<i64: 2, 32>}]} {
    %c0_i32 = arith.constant 0 : i32
    %0 = arith.cmpi eq, %arg1, %c0_i32 : i32
    %1 = arith.extui %0 : i1 to i32
    %c0_i32_0 = arith.constant 0 : i32
    %2 = arith.cmpi ne, %1, %c0_i32_0 : i32
    scf.if %2 {
      %cst_13 = arith.constant 0.000000e+00 : f32
      %15 = vector.broadcast %cst_13 : f32 to vector<2x32xf32>
      %c0_14 = arith.constant 0 : index
      %c0_15 = arith.constant 0 : index
      %16 = vector.load %arg6[%c0_14, %c0_15] : memref<2x32xf32, #tpu.memory_space<vmem>>, vector<2x32xf32>
      tpu.vector_store %arg6[%c0_14, %c0_15], %15 {strides = array<i32>} : memref<2x32xf32, #tpu.memory_space<vmem>>, vector<2x32xf32>,
      %cst_16 = arith.constant 0xFF800000 : f32
      %17 = vector.broadcast %cst_16 : f32 to vector<2x32xf32>
      %c0_17 = arith.constant 0 : index
      %c0_18 = arith.constant 0 : index
      %18 = vector.load %arg7[%c0_17, %c0_18] : memref<2x32xf32, #tpu.memory_space<vmem>>, vector<2x32xf32>
      tpu.vector_store %arg7[%c0_17, %c0_18], %17 {strides = array<i32>} : memref<2x32xf32, #tpu.memory_space<vmem>>, vector<2x32xf32>,
    } else {
    }
    %c0 = arith.constant 0 : index
    %c0_1 = arith.constant 0 : index
    %c0_2 = arith.constant 0 : index
    %3 = vector.load %arg2[%c0, %c0_1, %c0_2] : memref<2x32x128xf32, #tpu.memory_space<vmem>>, vector<2x32x128xf32>
    %c0_3 = arith.constant 0 : index
    %c0_4 = arith.constant 0 : index
    %4 = vector.load %arg6[%c0_3, %c0_4] : memref<2x32xf32, #tpu.memory_space<vmem>>, vector<2x32xf32>
    %cst = arith.constant dense<0.000000e+00> : vector<2x32xf32>
    %5 = vector.multi_reduction <add>, %3, %cst [2] : vector<2x32x128xf32> to vector<2x32xf32>
    %6 = arith.addf %4, %5 : vector<2x32xf32>
    %c0_5 = arith.constant 0 : index
    %c0_6 = arith.constant 0 : index
    %7 = vector.load %arg6[%c0_5, %c0_6] : memref<2x32xf32, #tpu.memory_space<vmem>>, vector<2x32xf32>
    tpu.vector_store %arg6[%c0_5, %c0_6], %6 {strides = array<i32>} : memref<2x32xf32, #tpu.memory_space<vmem>>, vector<2x32xf32>,
    %c0_7 = arith.constant 0 : index
    %c0_8 = arith.constant 0 : index
    %8 = vector.load %arg7[%c0_7, %c0_8] : memref<2x32xf32, #tpu.memory_space<vmem>>, vector<2x32xf32>
    %cst_9 = arith.constant dense<0xFF800000> : vector<2x32xf32>
    %9 = vector.multi_reduction <maximumf>, %3, %cst_9 [2] : vector<2x32x128xf32> to vector<2x32xf32>
    %10 = arith.maximumf %8, %9 : vector<2x32xf32>
    %c0_10 = arith.constant 0 : index
    %c0_11 = arith.constant 0 : index
    %11 = vector.load %arg7[%c0_10, %c0_11] : memref<2x32xf32, #tpu.memory_space<vmem>>, vector<2x32xf32>
    tpu.vector_store %arg7[%c0_10, %c0_11], %10 {strides = array<i32>} : memref<2x32xf32, #tpu.memory_space<vmem>>, vector<2x32xf32>,
    %c1_i32 = arith.constant 1 : i32
    %12 = arith.cmpi eq, %arg1, %c1_i32 : i32
    %13 = arith.extui %12 : i1 to i32
    %c0_i32_12 = arith.constant 0 : i32
    %14 = arith.cmpi ne, %13, %c0_i32_12 : i32
    scf.if %14 {
      %c0_13 = arith.constant 0 : index
      %c0_14 = arith.constant 0 : index
      %15 = vector.load %arg6[%c0_13, %c0_14] : memref<2x32xf32, #tpu.memory_space<vmem>>, vector<2x32xf32>
      %cst_15 = arith.constant 3.906250e-03 : f32
      %16 = vector.broadcast %cst_15 : f32 to vector<2x32xf32>
      %17 = arith.mulf %15, %16 : vector<2x32xf32>
      %c0_16 = arith.constant 0 : index
      %c0_17 = arith.constant 0 : index
      %18 = vector.load %arg7[%c0_16, %c0_17] : memref<2x32xf32, #tpu.memory_space<vmem>>, vector<2x32xf32>
      %19 = tpu.concatenate %17, %18 in 0 : vector<2x32xf32>, vector<2x32xf32> -> vector<4x32xf32>
      %c0_18 = arith.constant 0 : index
      %c0_19 = arith.constant 0 : index
      %20 = vector.load %arg3[%c0_18, %c0_19] : memref<32x2xf32, #tpu.memory_space<vmem>>, vector<32x2xf32>
      %cst_20 = arith.constant dense<0.000000e+00> : vector<4x2xf32>
      %21 = tpu.matmul %19, %20, %cst_20 {dimension_numbers = #tpu.dot_dimension_numbers<[1], [0], [0], [1], [0, 0, 1, 1], [], []>} : vector<4x32xf32>, vector<32x2xf32>, vector<4x2xf32> -> vector<4x2xf32>
      %cst_21 = arith.constant 0.000000e+00 : f32
      %22 = vector.broadcast %cst_21 : f32 to vector<4x2xf32>
      %23 = arith.maximumf %21, %22 : vector<4x2xf32>
      %c0_22 = arith.constant 0 : index
      %c0_23 = arith.constant 0 : index
      %24 = vector.load %arg4[%c0_22, %c0_23] : memref<2x32xf32, #tpu.memory_space<vmem>>, vector<2x32xf32>
      %cst_24 = arith.constant dense<0.000000e+00> : vector<4x32xf32>
      %25 = tpu.matmul %23, %24, %cst_24 {dimension_numbers = #tpu.dot_dimension_numbers<[1], [0], [0], [1], [0, 0, 1, 1], [], []>} : vector<4x2xf32>, vector<2x32xf32>, vector<4x32xf32> -> vector<4x32xf32>
      %26 = vector.extract_strided_slice %25 {offsets = [0, 0], sizes = [2, 32], strides = [1, 1]} : vector<4x32xf32> to vector<2x32xf32>
      %27 = vector.extract_strided_slice %25 {offsets = [2, 0], sizes = [2, 32], strides = [1, 1]} : vector<4x32xf32> to vector<2x32xf32>
      %28 = arith.addf %26, %27 : vector<2x32xf32>
      %29 = arith.negf %28 : vector<2x32xf32>
      %30 = math.exp %29 : vector<2x32xf32>
      %cst_25 = arith.constant 1.000000e+00 : f32
      %31 = vector.broadcast %cst_25 : f32 to vector<2x32xf32>
      %32 = arith.addf %31, %30 : vector<2x32xf32>
      %33 = arith.divf %31, %32 : vector<2x32xf32>
      %c0_26 = arith.constant 0 : index
      %c0_27 = arith.constant 0 : index
      %34 = vector.load %arg5[%c0_26, %c0_27] : memref<2x32xf32, #tpu.memory_space<vmem>>, vector<2x32xf32>
      tpu.vector_store %arg5[%c0_26, %c0_27], %33 {strides = array<i32>} : memref<2x32xf32, #tpu.memory_space<vmem>>, vector<2x32xf32>,
    } else {
    }
    return
  }
  func.func @transform_0(%arg0: i32, %arg1: i32) -> (i32, i32, i32) {
    %c0_i32 = arith.constant 0 : i32
    %c0_i32_0 = arith.constant 0 : i32
    return %arg0, %c0_i32, %arg1 : i32, i32, i32
  }
  func.func @transform_1(%arg0: i32, %arg1: i32) -> (i32, i32) {
    %c0_i32 = arith.constant 0 : i32
    %c0_i32_0 = arith.constant 0 : i32
    %c0_i32_1 = arith.constant 0 : i32
    return %c0_i32, %c0_i32_0 : i32, i32
  }
  func.func @transform_2(%arg0: i32, %arg1: i32) -> (i32, i32) {
    %c0_i32 = arith.constant 0 : i32
    %c0_i32_0 = arith.constant 0 : i32
    %c0_i32_1 = arith.constant 0 : i32
    return %c0_i32, %c0_i32_0 : i32, i32
  }
  func.func @transform_3(%arg0: i32, %arg1: i32) -> (i32, i32) {
    %c0_i32 = arith.constant 0 : i32
    %c0_i32_0 = arith.constant 0 : i32
    return %arg0, %c0_i32 : i32, i32
  }
}

</mosaic_0001>

<bundles_post_ra>
// kernel: tpu_custom_call.1
= control target key start
LH: loop header
LB: loop body
LE: loop exit
PB: predicated region body
PF: predicated region fallthrough
CT: control target
= control target key end

     0   :  { %8 = vsyncpa [#allocation5], 0  ;;  %s1006_s0 = inlined_call_operand.hbm [shape: f32[2,32,256], index: 0, kind: input, shape index: {}]   ;;  %s1007_s1 = inlined_call_operand.vmem [shape: f32[32,2], index: 1, kind: input, shape index: {}]   ;;  %s1008_s2 = inlined_call_operand.vmem [shape: f32[2,32], index: 2, kind: input, shape index: {}]   ;;  %s1009_s3 = inlined_call_operand.hbm [shape: f32[2,32], index: 3, kind: output, shape index: {}]  }
   0x1   :  { %10 = vsyncpa [#allocation5 + $0x1], 0 }
   0x2   :  { %11 = vsyncpa [#allocation6], 0  ;;  %s860_s12 = smov 0   ;;  %s862_s13 = smov 0  }
   0x3   :  { %s864_s14 = smov 0   ;;  %s866_s15 = smov 0  }
   0x4   :  { %s868_s16 = smov 0   ;;  %s870_s17 = smov 0  }
   0x5 LB: > { %s610_s18 = sadd.s32 4294967295, %s829_s17   ;;  %s26_s19 = sadd.s32 1, %s825_s16  ;;  %s829_s17 = sphi %s870_s17, %s17_s17   ;;  %s825_s16 = sphi %s868_s16, %s1018_s16   ;;  %s821_s15 = sphi %s866_s15, %s1017_s15   ;;  %s817_s14 = sphi %s864_s14, %s1016_s14   ;;  %s813_s13 = sphi %s862_s13, %s1015_s13   ;;  %s809_s12 = sphi %s860_s12, %s1014_s12  }
   0x6   : > { %p27_p0 = scmp.ge.s32.totalorder %s26_s19, 2  ;;  %s38_s20 = sadd.s32 1, %s817_s14 }
   0x7   : > { %p45_p1 = scmp.ne.s32.totalorder %s817_s14, %s813_s13  ;;  %p46_p2 = scmp.eq.s32.totalorder %s829_s17, 0 }
   0x8   : > { %s1020_s19 = smov (%p27_p0, %s26_s19), 0  ;;  %p51_p4 = scmp.ne.s32.totalorder %s813_s13, %s809_s12 }
   0x9   : > { %p896_p3 = por %p46_p2, %p45_p1  ;;  %s34_s22 = ssub.s32 %s825_s16, %s1020_s19 }
   0xa   : > { %p52_p5 = scmp.eq.s32.totalorder %s610_s18, 0  ;;  %p36_p6 = scmp.eq.s32.totalorder %s34_s22, 0 }
   0xb   : > { %p660_p8 = scmp.lt.s32.totalorder %s829_s17, 2  ;;  %s149_s25 = sand.u32 1, %s817_s14  }
   0xc   : > { %p905_p7 = por %p52_p5, %p51_p4  ;;  %s614_s26 = sshll.u32 %s825_s16, 7 }
   0xd   : > { %s911_s24 = scalar_select %p36_p6, %s817_s14, %s38_s20  }
   0xe   : > { %s613_s27 = sshll.u32 %s149_s25, 6  ;;  %s161_s30 = scalar_lea.hbm %s1006_s0, %s614_s26 }
   0xf   : > { %s153_s4 = scalar_lea.vmem [#allocation4], %s613_s27  ;;  %p920_p9 = pnand %p660_p8, %p896_p3 }
  0x10   : > { %s162_s5 = sshll.u32 %s153_s4, 4  ;;  %p615_p10 = scmp.ge.s32.totalorder %s829_s17, 1  ;;  %s163_s5 = int_to_ptr.vmem [resolvable:$true] %s162_s5 }
  0x11   : > { %s150_s7 = scalar_lea.sflag [#allocation5], %s149_s25  ;;  %p725_p11 = pneg %p920_p9 }
  0x12   : > { %s736_s8 = scalar_lea.vmem %s163_s5, 1024  ;;  %s831_s9 = smov [#allocation4]  }
  0x13   : > { %p737_p12 = scmp.ne.s32.totalorder %s163_s5, %s736_s8  ;;  %s741_s10 = sshll.u32 %s831_s9, 4  ;;  %s742_s10 = int_to_ptr.vmem [resolvable:$false] %s741_s10 }
  0x14   : > { %s743_s11 = scalar_lea.vmem %s742_s10, 2048  ;;  %p744_p1 = scmp.lt.s32.totalorder %s163_s5, %s742_s10 }
  0x15   : > { %p739_p13 = pnand %p737_p12, %p725_p11  ;;  %p745_p2 = scmp.lt.s32.totalorder %s743_s11, %s736_s8 }
  0x17   : > { %p740_p0 = pneg %p739_p13  ;;  %p746_p3 = por %p745_p2, %p744_p1 }
  0x19   : > { %p747_p4 = pnand %p746_p3, %p740_p0 }
  0x1b   : > { %750 = shalt.err (!%p747_p4)
}
  0x1c   : > { %s832_s12 = smov 256   ;;  %s833_s20 = smov 128  }
  0x1d   : > { %s834_s21 = smov 8   ;;  %p170_p5 = scmp.lt.s32.totalorder %s829_s17, 3 }
  0x1e   : > { %659 = dma.hbm_to_vmem [thread:$0]  (!%p920_p9), %s161_s30, 1024, %s163_s5, %s150_s7, %s832_s12, %s833_s20, %s834_s21  }
  0x1f   : > { %p171_p6 = pnand %p615_p10, %p170_p5 }
  0x20   : > { %s176_s22 = sand.u32 (!%p171_p6), 1, %s813_s13  }
  0x21   : > { %174 = sbr.rel (%p171_p6) target bundleno = 673 (0x2a1), region = 32  ;;  %s616_s25 = sshll.u32 (!%p171_p6), %s176_s22, 6 }
  0x22   : > { %s177_s26 = scalar_lea.sflag (!%p171_p6), [#allocation5], %s176_s22  ;;  %s180_s27 = scalar_lea.vmem (!%p171_p6), [#allocation4], %s616_s25 }
  0x26   : > { %800 = dma.done.wait (%p905_p7), %s177_s26, 1024  }
  0x27   : > { %802 = vsyncadd (%p905_p7), %s177_s26, 4294966272  ;;  %p617_p8 = scmp.ne.s32.totalorder %s821_s15, 0 }
  0x29   : > { %202 = sbr.rel (%p617_p8) target bundleno = 48 (0x30), region = 40 }
  0x2e   : > { %vm203_vm0 = vcmask 254976   ;;  %v835_v0 = vmov 0.0   ;;  %v836_v1 = vmov -inf  }
  0x2f   : > { %204 = vst.msk [vmem:[#allocation2] sm:$0x3] %vm203_vm0, %v835_v0  ;;  %205 = vst.msk [vmem:[#allocation3] sm:$0x3] %vm203_vm0, %v836_v1 }
  0x30 PF: > { %v210_v2 = vld [vmem:[%s180_s27 + $0x20] sm:$0xff]  ;;  %v211_v4 = vld [vmem:[%s180_s27 + $0x28] sm:$0xff]  ;;  %v212_v6 = vld [vmem:[%s180_s27 + $0x30] sm:$0xff]  ;;  %v239_v14 = vlaneseq  ;;  %vm250_vm1 = vcmask 130112   ;;  %vm257_vm2 = vcmask 195712   ;;  %vm264_vm3 = vcmask 261312  }
  0x31   : > { %v206_v3 = vld [vmem:[%s180_s27] sm:$0xff]  ;;  %223 = vadd.xlane.f32.xlu1 %v210_v2  ;;  %v207_v5 = vld [vmem:[%s180_s27 + $0x8] sm:$0xff]  ;;  %v208_v7 = vld [vmem:[%s180_s27 + $0x10] sm:$0xff]  ;;  %vm285_vm4 = vcmask 1041409   ;;  %vm289_vm5 = vcmask 254976   ;;  %p618_p7 = scmp.ne.s32.totalorder %s821_s15, 1 }
  0x32   : > { %215 = vadd.xlane.f32.xlu0 %v206_v3  ;;  %v213_v8 = vld [vmem:[%s180_s27 + $0x38] sm:$0xff]  ;;  %v240_v17 = vand.u32 127, %v239_v14  ;;  %v242_v21 = vshrl.u32 %v239_v14, 7 }
  0x33   : > { %v209_v9 = vld [vmem:[%s180_s27 + $0x18] sm:$0xff] }
  0x34   : > { %v245_v18 = vadd.s32 4294967288, %v240_v17  ;;  %v252_v22 = vadd.s32 4294967280, %v240_v17  ;;  %v259_v26 = vadd.s32 4294967272, %v240_v17  ;;  %v243_v27 = vsub.s32 %v240_v17, %v242_v21 }
  0x35   : > { %225 = vadd.xlane.f32.xlu1 %v211_v4 }
  0x36   : > { %217 = vadd.xlane.f32.xlu0 %v207_v5  ;;  %v248_v23 = vsub.s32 %v245_v18, %v242_v21  ;;  %v255_v28 = vsub.s32 %v252_v22, %v242_v21  ;;  %v262_v33 = vsub.s32 %v259_v26, %v242_v21  ;;  %v214_v52 = vld [vmem:[#allocation2] sm:$0x3]  ;;  %v291_v1 = vld [vmem:[#allocation3] sm:$0x3] }
  0x39   : > { %294 = vmax.xlane.f32.xlu1 %v207_v5 }
  0x3a   : > { %292 = vmax.xlane.f32.xlu0 %v206_v3 }
  0x3d   : > { %302 = vmax.xlane.f32.xlu1 %v211_v4 }
  0x3e   : > { %300 = vmax.xlane.f32.xlu0 %v210_v2 }
  0x41   : > { %227 = vadd.xlane.f32.xlu1 %v212_v6 }
  0x42   : > { %219 = vadd.xlane.f32.xlu0 %v208_v7 }
  0x45   : > { %304 = vmax.xlane.f32.xlu1 %v212_v6 }
  0x46   : > { %296 = vmax.xlane.f32.xlu0 %v208_v7 }
  0x49   : > { %229 = vadd.xlane.f32.xlu1 %v213_v8 }
  0x4a   : > { %221 = vadd.xlane.f32.xlu0 %v209_v9 }
  0x4d   : > { %306 = vmax.xlane.f32.xlu1 %v213_v8 }
  0x4e   : > { %298 = vmax.xlane.f32.xlu0 %v209_v9 }
  0xba   : > { %v224_v10 = vpop.xlane.xlu1 %223 }
  0xbb   : > { %v216_v11 = vpop.xlane.xlu0 %215  ;;  %v269_v34 = vrot.slane %v224_v10, %v243_v27 }
  0xbc   : > { %v244_v35 = vrot.slane %v216_v11, %v243_v27 }
  0xbe   : > { %v226_v12 = vpop.xlane.xlu1 %225 }
  0xbf   : > { %v218_v13 = vpop.xlane.xlu0 %217  ;;  %v273_v29 = vrot.slane %v226_v12, %v248_v23 }
  0xc0   : > { %v249_v30 = vrot.slane %v218_v13, %v248_v23 }
  0xc1   : > { %v274_v38 = vsel %vm250_vm1, %v273_v29, %v269_v34 }
  0xc2   : > { %v295_v15 = vpop.xlane.xlu1 %294  ;;  %v251_v39 = vsel %vm250_vm1, %v249_v30, %v244_v35 }
  0xc3   : > { %v293_v16 = vpop.xlane.xlu0 %292  ;;  %v323_v40 = vrot.slane %v295_v15, %v248_v23 }
  0xc4   : > { %v319_v41 = vrot.slane %v293_v16, %v243_v27 }
  0xc6   : > { %v303_v19 = vpop.xlane.xlu1 %302  ;;  %v324_v55 = vsel %vm250_vm1, %v323_v40, %v319_v41 }
  0xc7   : > { %v301_v20 = vpop.xlane.xlu0 %300  ;;  %v342_v44 = vrot.slane %v303_v19, %v248_v23 }
  0xc8   : > { %v338_v45 = vrot.slane %v301_v20, %v243_v27 }
  0xca   : > { %v228_v24 = vpop.xlane.xlu1 %227  ;;  %v343_v59 = vsel %vm250_vm1, %v342_v44, %v338_v45 }
  0xcb   : > { %v220_v25 = vpop.xlane.xlu0 %219  ;;  %v278_v36 = vrot.slane %v228_v24, %v255_v28 }
  0xcc   : > { %v256_v37 = vrot.slane %v220_v25, %v255_v28 }
  0xcd   : > { %v279_v48 = vsel %vm257_vm2, %v278_v36, %v274_v38 }
  0xce   : > { %v305_v31 = vpop.xlane.xlu1 %304  ;;  %v258_v49 = vsel %vm257_vm2, %v256_v37, %v251_v39 }
  0xcf   : > { %v297_v32 = vpop.xlane.xlu0 %296  ;;  %v347_v50 = vrot.slane %v305_v31, %v255_v28 }
  0xd0   : > { %v328_v51 = vrot.slane %v297_v32, %v255_v28 }
  0xd1   : > { %v348_v63 = vsel %vm257_vm2, %v347_v50, %v343_v59 }
  0xd2   : > { %v230_v42 = vpop.xlane.xlu1 %229  ;;  %v329_v0 = vsel %vm257_vm2, %v328_v51, %v324_v55 }
  0xd3   : > { %v222_v43 = vpop.xlane.xlu0 %221  ;;  %v283_v46 = vrot.slane %v230_v42, %v262_v33 }
  0xd4   : > { %v263_v47 = vrot.slane %v222_v43, %v262_v33 }
  0xd5   : > { %v284_v53 = vsel %vm264_vm3, %v283_v46, %v279_v48 }
  0xd6   : > { %v265_v54 = vsel %vm264_vm3, %v263_v47, %v258_v49  ;;  %v307_v57 = vpop.xlane.xlu1 %306 }
  0xd7   : > { %v286_v56 = vsel %vm285_vm4, %v284_v53, %v265_v54  ;;  %v299_v58 = vpop.xlane.xlu0 %298  ;;  %v352_v61 = vrot.slane %v307_v57, %v262_v33 }
  0xd8   : > { %v288_v60 = vadd.f32 %v286_v56, %v214_v52  ;;  %v333_v62 = vrot.slane %v299_v58, %v262_v33 }
  0xd9   : > { %v353_v2 = vsel %vm264_vm3, %v352_v61, %v348_v63 }
  0xda   : > { %290 = vst.msk [vmem:[#allocation2] sm:$0x3] %vm289_vm5, %v288_v60  ;;  %v334_v3 = vsel %vm264_vm3, %v333_v62, %v329_v0  ;;  %361 = sbr.rel (%p618_p7) target bundleno = 658 (0x292), region = 44 }
  0xdb   : > { %v354_v4 = vsel %vm285_vm4, %v353_v2, %v334_v3 }
  0xdc   : > { %v356_v5 = vmax.f32 %v291_v1, %v354_v4 }
  0xde   : > { %357 = vst.msk [vmem:[#allocation3] sm:$0x3] %vm289_vm5, %v356_v5 }
  0xdf   : > { %v373_v6 = vld [vmem:[%s1007_s1 + $0x18] sm:$0xff]  ;;  %v837_v7 = vmov 0.0   ;;  %v372_v8 = vld [vmem:[%s1007_s1 + $0x10] sm:$0xff]  ;;  %vm838_vm6 = vmmov 0   ;;  %v371_v13 = vld [vmem:[%s1007_s1 + $0x8] sm:$0xff]  ;;  %vm368_vm7 = vcmask 1041408  }
  0xe0   : > { %634 = vmatprep.subr.mxu0 %v837_v7  ;;  %642 = vmatprep.mubr.msk.f32.mxu0 %vm838_vm6, %v837_v7  ;;  %v370_v14 = vld [vmem:[%s1007_s1] sm:$0xff]  ;;  %vm374_vm8 = vcmask 261120   ;;  %vm450_vm9 = vcmask 15360  }
  0xe1   : > { %v362_v9 = vld [vmem:[#allocation2] sm:$0x3]  ;;  %635 = vmatpush3.msra.mxu0 %v373_v6  ;;  %645 = vmatprep.subr.mxu1 %v837_v7 }
  0xe2   : > { %v363_v11 = vmul.f32 0.00390625, %v362_v9  ;;  %636 = vmatprep.subr.mxu0 %v837_v7  ;;  %647 = vmatprep.mubr.msk.f32.mxu1 %vm838_vm6, %v837_v7  ;;  %v449_v16 = vld [vmem:[%s1008_s2] sm:$0x3] }
  0xe3   : > { %637 = vmatpush3.msra.mxu0 %v372_v8  ;;  %646 = vmatpush3.msk.msra.mxu1 %vm368_vm7, %v449_v16 }
  0xe4   : > { %638 = vmatprep.subr.mxu0 %v837_v7 }
  0xe5   : > { %v364_v10 = vld [vmem:[#allocation3] sm:$0x3]  ;;  %639 = vmatpush3.msra.mxu0 %v371_v13 }
  0xe6   : > { %v366_v12 = vrot.slane %v364_v10, 6  ;;  %640 = vmatprep.subr.mxu0 %v837_v7 }
  0xe7   : > { %641 = vmatpush3.msra.mxu0 %v370_v14 }
  0xe8   : > { %v369_v15 = vsel %vm368_vm7, %v363_v11, %v366_v12 }
  0xe9   : > { %643 = vmatmul.mubr.msk.f32.vlgmr.msra.gmra.mxu0 %vm374_vm8, %v369_v15 }
 0x1a9   : > { %v444_v17 = vpop.f32.mrf.mxu0 }
 0x1aa   : > { %v448_v18 = vmax.f32 %v444_v17, 0.0 }
 0x1ab   : > { %v644_v19 = vpop.f32.mrf.mxu0 }
 0x1ac   : > { %648 = vmatmul.mubr.msk.f32.vlgmr.msra.gmra.mxu1 %vm450_vm9, %v448_v18 }
 0x26c   : > { %v523_v20 = vpop.f32.mrf.mxu1 }
 0x26d   : > { %v528_v21 = vrot.slane %v523_v20, 2 }
 0x26e   : > { %v649_v22 = vpop.f32.mrf.mxu1 }
 0x26f   : > { %v530_v23 = vadd.f32 %v528_v21, %v523_v20 }
 0x271   : > { %v622_v24 = vmul.f32 -1.442695, %v530_v23 }
 0x273   : > { %719 = vpow2.f32 %v622_v24 }
 0x280   : > { %v720_v25 = vpop.eup %719 }
 0x281   : > { %v534_v26 = vadd.f32 1.0, %v720_v25 }
 0x283   : > { %721 = vrcp.f32 %v534_v26 }
 0x290   : > { %v722_v27 = vpop.eup %721 }
 0x291   : > { %537 = vst.msk [vmem:[#allocation7] sm:$0x3] %vm289_vm5, %v722_v27 }
 0x292 PF: > { %p973_p9 = scmp.eq.s32.totalorder %s610_s18, 1  ;;  %s839_s10 = smov [#allocation7]  }
 0x293   : > { %s547_s11 = sshll.u32 %s839_s10, 4  ;;  %s548_s11 = int_to_ptr.vmem [resolvable:$true] %s547_s11 }
 0x294   : > { %s751_s12 = scalar_lea.vmem %s548_s11, 32  ;;  %p758_p13 = scmp.lt.s32.totalorder %s548_s11, %s548_s11 }
 0x295   : > { %p752_p10 = scmp.ne.s32.totalorder %s548_s11, %s751_s12  ;;  %p759_p0 = scmp.lt.s32.totalorder %s751_s12, %s751_s12 }
 0x297   : > { %p753_p11 = pnand %p752_p10, %p973_p9  ;;  %p760_p1 = por %p759_p0, %p758_p13 }
 0x299   : > { %p754_p12 = pneg %p753_p11 }
 0x29b   : > { %p761_p2 = pnand %p760_p1, %p754_p12 }
 0x29d   : > { %764 = shalt.err (!%p761_p2)
}
 0x29e   : > { %653 = dma.vmem_to_hbm [thread:$0]  (%p973_p9), %s548_s11, 32, %s1009_s3, [#allocation6]  }
 0x29f   : > { %804 = dma.done.wait (%p973_p9), [#allocation6], 32  }
 0x2a0   : > { %806 = vsyncadd (%p973_p9), [#allocation6], 4294967264 }
 0x2a1 PF: > { %s17_s17 = sadd.s32 1, %s829_s17   ;;  %s1014_s12 = smov %s813_s13 }
 0x2a2   : > { %p14_p3 = scmp.ge.s32.totalorder %s17_s17, 4   ;;  %s1015_s13 = smov %s817_s14 }
 0x2a3   : > { %s1016_s14 = smov %s911_s24  ;;  %s1017_s15 = smov %s825_s16 }
 0x2a4   : > { %s1018_s16 = smov %s1020_s19  ;;  %16 = sbr.rel (!%p14_p3) target bundleno = 5 (0x5), region = 78 }
 0x2a9   :  { %560 = vsyncpa [#allocation5], 1 }
 0x2aa   :  { %562 = vsyncpa [#allocation5 + $0x1], 1 }
 0x2ab   :  { %563 = vsyncpa [#allocation6], 1 }
 0x2ac   :  { %565 = vsyncpa [#allocation6 + $0x1], 1 }

</bundles_post_ra>
